<compile_context>
chip_gen: v6e
topology: v6e:2x2x1
jax: 0.10.0
libtpu: 0.0.40
codegen_flags: <defaults>
</compile_context>

<pallas_src>
import jax
import jax.numpy as jnp
from jax import lax
from jax.experimental import pallas as pl
from jax.experimental.pallas import tpu as pltpu


# ---------------------------------------------------------------------------
# Pallas kernel: nearest-codeword search + quantization for one (book, tile).
# ---------------------------------------------------------------------------
def _vq_kernel(z_ref, e_ref, e2_ref, zq_ref, idx_ref, ssq_ref):
    # z_ref : (1, TN, d)   token tile for the current (book, tile) grid point
    # e_ref : (1, n_e, d)  full codebook of the current book (resident over token tiles)
    # e2_ref: (1, 1, n_e)  precomputed ||E||^2 (hoisted into the wrapper)
    z = z_ref[0]                                                     # (TN, d)
    e = e_ref[0]                                                     # (n_e, d)
    n_e = e.shape[0]

    # score = 2 z E^T - ||E||^2 ; argmax(score) == argmin ||z - E||^2
    # (||z||^2 is constant per row, so it drops out of the argmax.)
    xe = lax.dot_general(z, e, (((1,), (1,)), ((), ())),
                         preferred_element_type=jnp.float32)         # (TN, n_e) MXU
    score = 2.0 * xe - e2_ref[0]                                     # (TN, n_e) f32

    smax = jnp.max(score, axis=1)                                    # (TN,)
    iota = lax.broadcasted_iota(jnp.int32, score.shape, 1)
    cand = jnp.where(score == smax[:, None], iota, n_e)
    idx = jnp.min(cand, axis=1)                                      # first-occurrence argmax

    # z_q: one-hot matmul while n_e is small (MXU has slack); gather for big codebooks.
    if n_e >= 1024:
        zq = jnp.take(e, idx, axis=0)                                # row gather in VMEM
    else:
        one_hot = (iota == idx[:, None]).astype(e.dtype)             # (TN, n_e)
        zq = jnp.dot(one_hot, e, preferred_element_type=jnp.float32)  # (TN, d)

    zq_ref[0] = zq.astype(zq_ref.dtype)
    idx_ref[0] = idx[None, :].astype(jnp.int32)                      # lane-dense (1, TN)

    # ||z - z_q||^2 = ||z||^2 - max(2 z E^T - ||E||^2)  (no extra (TN, d) diff pass)
    zf = z.astype(jnp.float32)
    x2 = jnp.sum(zf * zf, axis=1)                                    # (TN,)
    ssq_ref[0] = jnp.maximum(x2 - smax, 0.0)[None, :]                # lane-dense (1, TN)


# ---------------------------------------------------------------------------
# Tiling / wrapper.
# ---------------------------------------------------------------------------
def _round_up(x, m):
    return (x + m - 1) // m * m


def _pick_tile_n(n_tokens, d, n_e, token_budget_bytes=16 * 1024 * 1024):
    """Largest token tile (multiple of 8; >=128 and MXU-aligned when possible) whose
    per-tile VMEM footprint fits a conservative budget (safe on v7x 64 MiB)."""
    n_pad8 = _round_up(n_tokens, 8)
    if n_pad8 <= 128:
        return n_pad8                          # one small tile, full-dim blocks

    def per_tile_bytes(t):
        return (2 * t * d * 4                  # z tile, double-buffered
                + 2 * t * d * 4                # zq tile, double-buffered
                + 4 * t * n_e * 4              # score / one-hot temporaries (headroom)
                + 4 * t * 8)                   # idx / ssq rows

    tn = 1024                                  # multiple of the 256-wide MXU on v6e/v7x
    while tn > 128 and (per_tile_bytes(tn) > token_budget_bytes or tn > n_pad8):
        tn //= 2
    return tn


def vq_books(z_books, codebooks, *, tile_n=None):
    """Quantize z_books:[K, N, d] against one codebook per book, codebooks:[K, n_e, d].

    Returns (z_q:[K, N, d] in z dtype, idx:[K, N] int32, ssq:[K, N] f32 = ||z - z_q||^2)."""
    K, N, d = z_books.shape
    n_e = codebooks.shape[1]

    if tile_n is None:
        tile_n = _pick_tile_n(N, d, n_e)
    n_pad = _round_up(N, tile_n)
    z_in = z_books if n_pad == N else jnp.pad(z_books, ((0, 0), (0, n_pad - N), (0, 0)))
    num_tiles = n_pad // tile_n

    # Hoisted out of the kernel: ||E||^2 (f32) and codebook in the matmul dtype
    # (bf16 inputs keep the distance matmul on the native bf16 MXU path).
    e2 = jnp.sum(codebooks.astype(jnp.float32) ** 2, axis=2)[:, None, :]      # (K, 1, n_e)
    e_in = codebooks if codebooks.dtype == z_in.dtype else codebooks.astype(z_in.dtype)

    # VMEM sizing: double-buffered token tiles + resident codebook + temporaries.
    z_item = jnp.dtype(z_in.dtype).itemsize
    e_item = jnp.dtype(e_in.dtype).itemsize
    vmem_est = (4 * tile_n * d * z_item
                + 2 * (n_e * d * e_item + n_e * 4)
                + 4 * tile_n * n_e * 4
                + 4 * tile_n * 8)
    # Cap at v7x's 64 MiB physical VMEM (v5e/v6e have 128 MiB).
    vmem_limit = min(64 * 1024 * 1024, max(32 * 1024 * 1024, (vmem_est * 3) // 2))

    zq, idx_row, ssq_row = pl.pallas_call(
        _vq_kernel,
        out_shape=(
            jax.ShapeDtypeStruct((K, n_pad, d), z_in.dtype),     # z_q in input dtype
            jax.ShapeDtypeStruct((K, 1, n_pad), jnp.int32),      # lane-dense indices
            jax.ShapeDtypeStruct((K, 1, n_pad), jnp.float32),    # lane-dense ||z-zq||^2
        ),
        grid_spec=pltpu.PrefetchScalarGridSpec(
            num_scalar_prefetch=0,
            grid=(K, num_tiles),                                 # book outer: codebook resident
            in_specs=[
                pl.BlockSpec((1, tile_n, d), lambda b, i: (b, i, 0)),   # token tile
                pl.BlockSpec((1, n_e, d), lambda b, i: (b, 0, 0)),      # codebook (resident)
                pl.BlockSpec((1, 1, n_e), lambda b, i: (b, 0, 0)),      # ||E||^2  (resident)
            ],
            out_specs=[
                pl.BlockSpec((1, tile_n, d), lambda b, i: (b, i, 0)),
                pl.BlockSpec((1, 1, tile_n), lambda b, i: (b, 0, i)),
                pl.BlockSpec((1, 1, tile_n), lambda b, i: (b, 0, i)),
            ],
        ),
        compiler_params=pltpu.CompilerParams(
            dimension_semantics=("parallel", "parallel"),   # both axes independent
            vmem_limit_bytes=vmem_limit,
        ),
    )(z_in, e_in, e2)

    return zq[:, :N], idx_row[:, 0, :N], ssq_row[:, 0, :N]


# ---------------------------------------------------------------------------
# Module-equivalent wrapper (glue in plain JAX).
# ---------------------------------------------------------------------------
class VectorQuantizerPallas:
    def __init__(self, n_e, e_dim, beta, nbooks=1, key=None):
        assert n_e % nbooks == 0, "nb codebooks should divide nb centroids"
        self.n_e = n_e
        self.e_dim = e_dim
        self.beta = beta
        self.nbooks = nbooks
        self.n_e_i = n_e // nbooks
        embed_dims = (nbooks - 1) * [e_dim // nbooks] + [
            e_dim - (nbooks - 1) * (e_dim // nbooks)
        ]
        self.embed_dims = embed_dims

        # deterministic init: uniform(-1/n_e_i, 1/n_e_i), same as the torch module
        if key is None:
            key = jax.random.PRNGKey(0)
        keys = jax.random.split(key, nbooks)
        self.codebooks = [
            jax.random.uniform(
                keys[i], (self.n_e_i, d),
                minval=-1.0 / self.n_e_i, maxval=1.0 / self.n_e_i,
                dtype=jnp.float32,
            )
            for i, d in enumerate(embed_dims)
        ]

    def __call__(self, z, p=1.0, key=None):
        B, S, D = z.shape
        assert D == self.e_dim
        N = B * S
        dims = self.embed_dims

        if all(di == dims[0] for di in dims):
            # All books share one width: fuse every book into a single pallas_call
            # with a (books, token_tiles) grid.
            d_i = dims[0]
            z_books = jnp.transpose(z.reshape(N, self.nbooks, d_i), (1, 0, 2))  # [K,N,d]
            cb = jnp.stack(self.codebooks, axis=0)                              # [K,n_e_i,d]
            zq_b, idx_b, ssq_b = vq_books(z_books, cb)
            z_q = jnp.transpose(zq_b, (1, 0, 2)).reshape(B, S, D).astype(z.dtype)
            min_encoding_indices = jnp.transpose(idx_b, (1, 0)).reshape(B, S, self.nbooks)
            ssq_total = jnp.sum(ssq_b, axis=0)
        else:
            # Ragged book widths: one pallas_call per book.
            zq_parts, idx_parts = [], []
            ssq_total = jnp.zeros((N,), jnp.float32)
            off = 0
            for i, d_i in enumerate(dims):
                z_i = z[..., off:off + d_i].reshape(1, N, d_i)
                off += d_i
                zq_b, idx_b, ssq_b = vq_books(z_i, self.codebooks[i][None])
                zq_parts.append(zq_b[0].reshape(B, S, d_i).astype(z.dtype))
                idx_parts.append(idx_b[0].reshape(B, S, 1))
                ssq_total = ssq_total + ssq_b[0]
            z_q = jnp.concatenate(zq_parts, axis=-1)
            min_encoding_indices = jnp.concatenate(idx_parts, axis=-1)   # int32 (torch: int64)

        # loss = mean((zq.detach()-z)^2,-1) + beta*mean((zq-z.detach())^2,-1)
        #      == (1+beta) * ||z - z_q||^2 / e_dim   (detach matters only for autodiff)
        loss = (1.0 + self.beta) * ssq_total.reshape(B, S) / float(self.e_dim)

        if p != 1.0:
            # torch.bernoulli uses global RNG state; here an explicit key (default 0).
            if key is None:
                key = jax.random.PRNGKey(0)
            quant_mask = jax.random.bernoulli(key, p, z.shape).astype(z_q.dtype)
            z_q = quant_mask * z_q + (1.0 - quant_mask) * z

        # straight-through z + (z_q - z).detach() -> numerically z_q
        return z_q, loss, min_encoding_indices


# ---------------------------------------------------------------------------
# Pure-JAX reference for verification.
# ---------------------------------------------------------------------------
def ref_forward(z, codebooks, embed_dims, beta):
    B, S, D = z.shape
    zq_parts, idx_parts = [], []
    off = 0
    for i, d in enumerate(embed_dims):
        z_i = z[..., off:off + d].reshape(-1, d)
        off += d
        e = codebooks[i]
        dist = -(
            jnp.sum(z_i ** 2, axis=1, keepdims=True)
            - 2.0 * z_i @ e.T
            + jnp.sum(e ** 2, axis=1)[None, :]
        )
        idx = jnp.argmax(dist, axis=1)
        zq = e[idx]
        zq_parts.append(zq.reshape(B, S, d))
        idx_parts.append(idx.reshape(B, S, 1).astype(jnp.int32))
    z_q = jnp.concatenate(zq_parts, axis=-1)
    indices = jnp.concatenate(idx_parts, axis=-1)
    loss = jnp.mean((z_q - z) ** 2, axis=-1) * (1.0 + beta)
    return z_q, loss, indices


if __name__ == "__main__":
    # small shapes consistent with the module: z is [batch, seq, e_dim]
    B, S, e_dim, n_e, beta = 2, 8, 32, 16, 0.25

    key = jax.random.PRNGKey(0)
    k_z, k_cb = jax.random.split(key)
    z = jax.random.normal(k_z, (B, S, e_dim), dtype=jnp.float32)

    for nbooks in (1, 2):
        vq = VectorQuantizerPallas(n_e, e_dim, beta, nbooks=nbooks, key=k_cb)
        z_q, loss, idx = vq(z)
        jax.block_until_ready((z_q, loss, idx))

        z_q_ref, loss_ref, idx_ref = ref_forward(z, vq.codebooks, vq.embed_dims, beta)
        assert z_q.shape == (B, S, e_dim) and loss.shape == (B, S)
        assert idx.shape == (B, S, nbooks)
        assert jnp.allclose(z_q, z_q_ref, atol=1e-5, rtol=1e-5)
        assert jnp.allclose(loss, loss_ref, atol=1e-4, rtol=1e-4)
        assert jnp.array_equal(idx, idx_ref)

    print("KERNEL_OK")
</pallas_src>

<mosaic_0001>
module attributes {stable_mosaic.version = 11 : i64} {
  func.func @_vq_kernel(%arg0: i32, %arg1: i32, %arg2: memref<1x16x32xf32, #tpu.memory_space<vmem>>, %arg3: memref<1x16x32xf32, #tpu.memory_space<vmem>>, %arg4: memref<1x1x16xf32, #tpu.memory_space<vmem>>, %arg5: memref<1x16x32xf32, #tpu.memory_space<vmem>>, %arg6: memref<1x1x16xi32, #tpu.memory_space<vmem>>, %arg7: memref<1x1x16xf32, #tpu.memory_space<vmem>>) attributes {dimension_semantics = [#tpu.dimension_semantics<parallel>, #tpu.dimension_semantics<parallel>], iteration_bounds = array<i64: 1, 1>, scalar_prefetch = 0 : i64, scratch_operands = 0 : i64, tpu.core_type = #tpu.core_type<tc>, window_params = [{transform_indices = @transform_0, window_bounds = array<i64: 1, 16, 32>}, {transform_indices = @transform_1, window_bounds = array<i64: 1, 16, 32>}, {transform_indices = @transform_2, window_bounds = array<i64: 1, 1, 16>}, {transform_indices = @transform_3, window_bounds = array<i64: 1, 16, 32>}, {transform_indices = @transform_4, window_bounds = array<i64: 1, 1, 16>}, {transform_indices = @transform_5, window_bounds = array<i64: 1, 1, 16>}]} {
    %c0 = arith.constant 0 : index
    %c0_0 = arith.constant 0 : index
    %c0_1 = arith.constant 0 : index
    %0 = vector.load %arg2[%c0, %c0_0, %c0_1] : memref<1x16x32xf32, #tpu.memory_space<vmem>>, vector<1x16x32xf32>
    %1 = vector.shape_cast %0 : vector<1x16x32xf32> to vector<16x32xf32>
    %c0_2 = arith.constant 0 : index
    %c0_3 = arith.constant 0 : index
    %c0_4 = arith.constant 0 : index
    %2 = vector.load %arg3[%c0_2, %c0_3, %c0_4] : memref<1x16x32xf32, #tpu.memory_space<vmem>>, vector<1x16x32xf32>
    %3 = vector.shape_cast %2 : vector<1x16x32xf32> to vector<16x32xf32>
    %cst = arith.constant dense<0.000000e+00> : vector<16x16xf32>
    %4 = tpu.matmul %1, %3, %cst {dimension_numbers = #tpu.dot_dimension_numbers<[1], [1], [0], [0], [0, 0, 1, 0], [], []>} : vector<16x32xf32>, vector<16x32xf32>, vector<16x16xf32> -> vector<16x16xf32>
    %cst_5 = arith.constant 2.000000e+00 : f32
    %5 = vector.broadcast %cst_5 : f32 to vector<16x16xf32>
    %6 = arith.mulf %5, %4 : vector<16x16xf32>
    %c0_6 = arith.constant 0 : index
    %c0_7 = arith.constant 0 : index
    %c0_8 = arith.constant 0 : index
    %7 = vector.load %arg4[%c0_6, %c0_7, %c0_8] : memref<1x1x16xf32, #tpu.memory_space<vmem>>, vector<1x1x16xf32>
    %8 = vector.shape_cast %7 : vector<1x1x16xf32> to vector<1x16xf32>
    %9 = vector.broadcast %8 : vector<1x16xf32> to vector<16x16xf32>
    %10 = arith.subf %6, %9 : vector<16x16xf32>
    %cst_9 = arith.constant dense<0xFF800000> : vector<16xf32>
    %11 = vector.multi_reduction <maximumf>, %10, %cst_9 [1] : vector<16x16xf32> to vector<16xf32>
    %12 = tpu.iota {dimensions = array<i32: 1>} : vector<16x16xi32>
    %13 = vector.shape_cast %11 : vector<16xf32> to vector<16x1xf32>
    %14 = vector.broadcast %13 : vector<16x1xf32> to vector<16x16xf32>
    %15 = arith.cmpf oeq, %10, %14 : vector<16x16xf32>
    %c16_i32 = arith.constant 16 : i32
    %16 = vector.broadcast %c16_i32 : i32 to vector<16x16xi32>
    %17 = arith.select %15, %12, %16 : vector<16x16xi1>, vector<16x16xi32>
    %cst_10 = arith.constant dense<2147483647> : vector<16xi32>
    %18 = vector.multi_reduction <minsi>, %17, %cst_10 [1] : vector<16x16xi32> to vector<16xi32>
    %19 = vector.shape_cast %18 : vector<16xi32> to vector<16x1xi32>
    %20 = vector.broadcast %19 : vector<16x1xi32> to vector<16x16xi32>
    %21 = arith.cmpi eq, %12, %20 : vector<16x16xi32>
    %22 = arith.extui %21 : vector<16x16xi1> to vector<16x16xi32>
    %23 = arith.sitofp %22 : vector<16x16xi32> to vector<16x16xf32>
    %cst_11 = arith.constant dense<0.000000e+00> : vector<16x32xf32>
    %24 = tpu.matmul %23, %3, %cst_11 {dimension_numbers = #tpu.dot_dimension_numbers<[1], [0], [0], [1], [0, 0, 1, 1], [], []>} : vector<16x16xf32>, vector<16x32xf32>, vector<16x32xf32> -> vector<16x32xf32>
    %c0_12 = arith.constant 0 : index
    %c0_13 = arith.constant 0 : index
    %c0_14 = arith.constant 0 : index
    %25 = vector.load %arg5[%c0_12, %c0_13, %c0_14] : memref<1x16x32xf32, #tpu.memory_space<vmem>>, vector<1x16x32xf32>
    %26 = vector.shape_cast %25 : vector<1x16x32xf32> to vector<16x32xf32>
    %27 = vector.shape_cast %24 : vector<16x32xf32> to vector<1x16x32xf32>
    tpu.vector_store %arg5[%c0_12, %c0_13, %c0_14], %27 {strides = array<i32>} : memref<1x16x32xf32, #tpu.memory_space<vmem>>, vector<1x16x32xf32>,
    %28 = vector.shape_cast %18 : vector<16xi32> to vector<1x16xi32>
    %c0_15 = arith.constant 0 : index
    %c0_16 = arith.constant 0 : index
    %c0_17 = arith.constant 0 : index
    %29 = vector.load %arg6[%c0_15, %c0_16, %c0_17] : memref<1x1x16xi32, #tpu.memory_space<vmem>>, vector<1x1x16xi32>
    %30 = vector.shape_cast %29 : vector<1x1x16xi32> to vector<1x16xi32>
    %31 = vector.shape_cast %28 : vector<1x16xi32> to vector<1x1x16xi32>
    tpu.vector_store %arg6[%c0_15, %c0_16, %c0_17], %31 {strides = array<i32>} : memref<1x1x16xi32, #tpu.memory_space<vmem>>, vector<1x1x16xi32>,
    %32 = arith.mulf %1, %1 : vector<16x32xf32>
    %cst_18 = arith.constant dense<0.000000e+00> : vector<16xf32>
    %33 = vector.multi_reduction <add>, %32, %cst_18 [1] : vector<16x32xf32> to vector<16xf32>
    %34 = arith.subf %33, %11 : vector<16xf32>
    %cst_19 = arith.constant 0.000000e+00 : f32
    %35 = vector.broadcast %cst_19 : f32 to vector<16xf32>
    %36 = arith.maximumf %34, %35 : vector<16xf32>
    %37 = vector.shape_cast %36 : vector<16xf32> to vector<1x16xf32>
    %c0_20 = arith.constant 0 : index
    %c0_21 = arith.constant 0 : index
    %c0_22 = arith.constant 0 : index
    %38 = vector.load %arg7[%c0_20, %c0_21, %c0_22] : memref<1x1x16xf32, #tpu.memory_space<vmem>>, vector<1x1x16xf32>
    %39 = vector.shape_cast %38 : vector<1x1x16xf32> to vector<1x16xf32>
    %40 = vector.shape_cast %37 : vector<1x16xf32> to vector<1x1x16xf32>
    tpu.vector_store %arg7[%c0_20, %c0_21, %c0_22], %40 {strides = array<i32>} : memref<1x1x16xf32, #tpu.memory_space<vmem>>, vector<1x1x16xf32>,
    return
  }
  func.func @transform_0(%arg0: i32, %arg1: i32) -> (i32, i32, i32) {
    %c0_i32 = arith.constant 0 : i32
    %c0_i32_0 = arith.constant 0 : i32
    return %arg0, %arg1, %c0_i32 : i32, i32, i32
  }
  func.func @transform_1(%arg0: i32, %arg1: i32) -> (i32, i32, i32) {
    %c0_i32 = arith.constant 0 : i32
    %c0_i32_0 = arith.constant 0 : i32
    %c0_i32_1 = arith.constant 0 : i32
    return %arg0, %c0_i32, %c0_i32_0 : i32, i32, i32
  }
  func.func @transform_2(%arg0: i32, %arg1: i32) -> (i32, i32, i32) {
    %c0_i32 = arith.constant 0 : i32
    %c0_i32_0 = arith.constant 0 : i32
    %c0_i32_1 = arith.constant 0 : i32
    return %arg0, %c0_i32, %c0_i32_0 : i32, i32, i32
  }
  func.func @transform_3(%arg0: i32, %arg1: i32) -> (i32, i32, i32) {
    %c0_i32 = arith.constant 0 : i32
    %c0_i32_0 = arith.constant 0 : i32
    return %arg0, %arg1, %c0_i32 : i32, i32, i32
  }
  func.func @transform_4(%arg0: i32, %arg1: i32) -> (i32, i32, i32) {
    %c0_i32 = arith.constant 0 : i32
    %c0_i32_0 = arith.constant 0 : i32
    return %arg0, %c0_i32, %arg1 : i32, i32, i32
  }
  func.func @transform_5(%arg0: i32, %arg1: i32) -> (i32, i32, i32) {
    %c0_i32 = arith.constant 0 : i32
    %c0_i32_0 = arith.constant 0 : i32
    return %arg0, %c0_i32, %arg1 : i32, i32, i32
  }
}

</mosaic_0001>

<bundles_post_ra>
// kernel: tpu_custom_call.1
= control target key start
LH: loop header
LB: loop body
LE: loop exit
PB: predicated region body
PF: predicated region fallthrough
CT: control target
= control target key end

     0   :  { %11 = vsyncpa [#allocation3], 0  ;;  %s593_s0 = inlined_call_operand.hbm [shape: f32[1,16,32], index: 0, kind: input, shape index: {}]   ;;  %s594_s1 = inlined_call_operand.hbm [shape: f32[1,16,32], index: 1, kind: input, shape index: {}]   ;;  %s595_s2 = inlined_call_operand.vmem [shape: f32[1,1,16], index: 2, kind: input, shape index: {}]   ;;  %s596_s3 = inlined_call_operand.hbm [shape: f32[1,16,32], index: 3, kind: output, shape index: {0}]   ;;  %s597_s4 = inlined_call_operand.hbm [shape: s32[1,1,16], index: 4, kind: output, shape index: {1}]   ;;  %s598_s5 = inlined_call_operand.hbm [shape: f32[1,1,16], index: 5, kind: output, shape index: {2}]  }
   0x1   :  { %12 = vsyncpa [#allocation6], 0 }
   0x2   :  { %13 = vsyncpa [#allocation4], 0 }
   0x3   :  { %14 = vsyncpa [#allocation9], 0  ;;  %s512_s18 = smov [#allocation2]  }
   0x4   :  { %s20_s19 = sshll.u32 %s512_s18, 4  ;;  %s21_s19 = int_to_ptr.vmem [resolvable:$true] %s20_s19 }
   0x5   :  { %s412_s20 = scalar_lea.vmem %s21_s19, 256  ;;  %p417_p1 = scmp.lt.s32.totalorder %s21_s19, %s21_s19 }
   0x6   :  { %p413_p0 = scmp.ne.s32.totalorder %s21_s19, %s412_s20  ;;  %p418_p2 = scmp.lt.s32.totalorder %s412_s20, %s412_s20 }
   0x8   :  { %p419_p3 = por %p418_p2, %p417_p1 }
   0xa   :  { %p420_p4 = pnand %p419_p3, %p413_p0 }
   0xc   :  { %423 = shalt.err (!%p420_p4)
}
   0xd   :  { %s513_s21 = smov 128   ;;  %s514_s22 = smov 8  }
   0xe   :  { %26 = dma.hbm_to_vmem [thread:$0]  %s593_s0, 256, %s21_s19, [#allocation3], %s513_s21, %s513_s21, %s514_s22  }
   0xf   :  { %s515_s25 = smov [#allocation5]  }
  0x10   :  { %s32_s26 = sshll.u32 %s515_s25, 4  ;;  %s33_s26 = int_to_ptr.vmem [resolvable:$true] %s32_s26 }
  0x11   :  { %s432_s27 = scalar_lea.vmem %s33_s26, 256  ;;  %p437_p6 = scmp.lt.s32.totalorder %s33_s26, %s33_s26 }
  0x12   :  { %p433_p5 = scmp.ne.s32.totalorder %s33_s26, %s432_s27  ;;  %p438_p7 = scmp.lt.s32.totalorder %s432_s27, %s432_s27 }
  0x14   :  { %p439_p8 = por %p438_p7, %p437_p6 }
  0x16   :  { %p440_p9 = pnand %p439_p8, %p433_p5 }
  0x18   :  { %443 = shalt.err (!%p440_p9)
}
  0x19   :  { %38 = dma.hbm_to_vmem [thread:$0]  %s594_s1, 256, %s33_s26, [#allocation6], %s513_s21, %s513_s21, %s514_s22  }
  0x1a   :  { %504 = dma.done.wait [#allocation3], 256  }
  0x1b   :  { %505 = vsyncadd [#allocation3], 4294967040 }
  0x1c   :  { %506 = dma.done.wait [#allocation6], 256  }
  0x1d   :  { %507 = vsyncadd [#allocation6], 4294967040  ;;  %vm51_vm0 = vcmask 261120   ;;  %v50_v0 = vld [vmem:[#allocation5 + $0x8] sm:$0xff]  ;;  %v49_v1 = vld [vmem:[#allocation5] sm:$0xff]  ;;  %vm150_vm1 = vcmask 130048   ;;  %v157_v13 = vlaneseq }
  0x1e   :  { %v47_v2 = vld [vmem:[#allocation2] sm:$0xff]  ;;  %382 = vmatprep.subr.msk.mxu0 %vm51_vm0, %v50_v0  ;;  %389 = vmatprep.subr.mxu1 %v50_v0  ;;  %v48_v3 = vld [vmem:[#allocation2 + $0x8] sm:$0xff]  ;;  %v516_v52 = vmov 0.0   ;;  %vm291_vm7 = vcmask 130112   ;;  %vm293_vm8 = vcmask 122880  }
  0x1f   :  { %386 = vmatprep.mubr.msk.f32.mxu0 %vm51_vm0, %v47_v2  ;;  %383 = vmatpush3.xpose.msk.msra.mxu0 %vm51_vm0, %v50_v0  ;;  %v369_v8 = vld [vmem:[%s595_s2] ss:$0 sm:$0xff]  ;;  %v158_v14 = vand.u32 127, %v157_v13  ;;  %v295_v26 = vmul.f32 %v47_v2, %v47_v2  ;;  %v296_v34 = vmul.f32 %v48_v3, %v48_v3  ;;  %v283_v39 = vshrl.u32 %v157_v13, 7  ;;  %s517_s2 = smov [#allocation8]  }
  0x20   :  { %384 = vmatprep.subr.msk.mxu0 %vm51_vm0, %v49_v1  ;;  %390 = vmatpush3.msra.mxu1 %v50_v0  ;;  %s338_s30 = sshll.u32 %s517_s2, 4  ;;  %s339_s30 = int_to_ptr.vmem [resolvable:$true] %s338_s30 }
  0x21   :  { %391 = vmatprep.subr.mxu1 %v49_v1  ;;  %v297_v32 = vsel %vm51_vm0, %v295_v26, 0.0  ;;  %v300_v36 = vsel %vm51_vm0, %v296_v34, 0.0  ;;  %v286_v43 = vadd.s32 4294967288, %v158_v14  ;;  %v284_v46 = vsub.s32 %v158_v14, %v283_v39  ;;  %s444_s6 = scalar_lea.vmem %s339_s30, 16  ;;  %s448_s7 = scalar_lea.vmem %s339_s30, 32 }
  0x22   :  { %392 = vmatpush3.msra.mxu1 %v49_v1  ;;  %p445_p10 = scmp.ne.s32.totalorder %s339_s30, %s444_s6  ;;  %p449_p11 = scmp.lt.s32.totalorder %s339_s30, %s339_s30 }
  0x23   :  { %385 = vmatpush3.xpose.msk.msra.mxu0 %vm51_vm0, %v49_v1  ;;  %v289_v49 = vsub.s32 %v286_v43, %v283_v39  ;;  %p450_p12 = scmp.lt.s32.totalorder %s448_s7, %s444_s6 }
  0x25   :  { %p451_p13 = por %p450_p12, %p449_p11 }
  0x26   :  { %387 = vmatmul.mubr.msk.f32.vlgmr.msra.gmra.mxu0 %vm51_vm0, %v48_v3 }
  0x27   :  { %p452_p0 = pnand %p451_p13, %p445_p10 }
  0xe6   :  { %v388_v4 = vpop.f32.mrf.mxu0 }
  0xe7   :  { %v140_v6 = vmul.f32 2.0, %v388_v4 }
  0xe8   :  { %v130_v5 = vpop.f32.mrf.mxu0 }
  0xe9   :  { %v139_v7 = vmul.f32 2.0, %v130_v5  ;;  %v149_v11 = vsub.f32 %v140_v6, %v369_v8 }
  0xeb   :  { %v148_v9 = vsub.f32 %v139_v7, %v369_v8  ;;  %v154_v12 = vsel %vm150_vm1, %v149_v11, -inf }
  0xed   :  { %v151_v10 = vsel %vm150_vm1, %v148_v9, -inf }
  0xee   :  { %152 = vmax.xlane.f32.xlu0 %v151_v10 }
  0xf2   :  { %155 = vmax.xlane.f32.xlu0 %v154_v12 }
 0x177   :  { %v153_v15 = vpop.xlane.xlu0 %152 }
 0x178   :  { %vm159_vm2 = vcmp.eq.f32.partialorder %v148_v9, %v153_v15 }
 0x179   :  { %v161_v16 = vsel %vm159_vm2, %v158_v14, 16 }
 0x17a   :  { %v163_v17 = vsel %vm150_vm1, %v161_v16, 2147483647 }
 0x17b   :  { %v156_v18 = vpop.xlane.xlu0 %155  ;;  %v165_v19 = vshra.s32 %v163_v17, 16  ;;  %v164_v25 = vand.u32 65535, %v163_v17 }
 0x17c   :  { %vm160_vm3 = vcmp.eq.f32.partialorder %v149_v11, %v156_v18 }
 0x17d   :  { %v162_v20 = vsel %vm160_vm3, %v158_v14, 16  ;;  %v167_v21 = vcvt.s32.f32 %v165_v19  ;;  %v166_v28 = vcvt.s32.f32 %v164_v25 }
 0x17e   :  { %v178_v22 = vsel %vm150_vm1, %v162_v20, 2147483647 }
 0x17f   :  { %168 = vmin.xlane.f32.xlu1 %v167_v21  ;;  %v180_v23 = vshra.s32 %v178_v22, 16  ;;  %v179_v29 = vand.u32 65535, %v178_v22 }
 0x181   :  { %v182_v24 = vcvt.s32.f32 %v180_v23  ;;  %v181_v33 = vcvt.s32.f32 %v179_v29 }
 0x183   :  { %183 = vmin.xlane.f32.xlu1 %v182_v24 }
 0x208   :  { %v169_v27 = vpop.xlane.xlu1 %168 }
 0x209   :  { %vm170_vm4 = vcmp.eq.f32.partialorder %v167_v21, %v169_v27  ;;  %v175_v37 = vcvt.f32.s32 %v169_v27 }
 0x20a   :  { %v171_v30 = vsel %vm170_vm4, %v166_v28, inf }
 0x20b   :  { %172 = vmin.xlane.f32.xlu0 %v171_v30  ;;  %v176_v41 = vshll.u32 %v175_v37, 16 }
 0x20c   :  { %v184_v31 = vpop.xlane.xlu1 %183 }
 0x20d   :  { %vm185_vm5 = vcmp.eq.f32.partialorder %v182_v24, %v184_v31  ;;  %v190_v38 = vcvt.f32.s32 %v184_v31 }
 0x20e   :  { %v186_v35 = vsel %vm185_vm5, %v181_v33, inf }
 0x20f   :  { %298 = vadd.xlane.f32.xlu0 %v297_v32  ;;  %187 = vmin.xlane.f32.xlu1 %v186_v35  ;;  %v191_v45 = vshll.u32 %v190_v38, 16 }
 0x213   :  { %301 = vadd.xlane.f32.xlu1 %v300_v36 }
 0x294   :  { %v173_v40 = vpop.xlane.xlu0 %172 }
 0x295   :  { %v174_v42 = vcvt.f32.s32 %v173_v40 }
 0x297   :  { %v177_v44 = vadd.s32 %v176_v41, %v174_v42 }
 0x298   :  { %v188_v47 = vpop.xlane.xlu1 %187  ;;  %v299_v48 = vpop.xlane.xlu0 %298 }
 0x299   :  { %v189_v50 = vcvt.f32.s32 %v188_v47  ;;  %v303_v51 = vsub.f32 %v299_v48, %v153_v15  ;;  %vm193_vm6 = vcmp.eq.s32.totalorder %v158_v14, %v177_v44  ;;  %v285_v55 = vrot.slane %v177_v44, %v284_v46 }
 0x29a   :  { %v370_v53 = vsel %vm193_vm6, 1.0, %v516_v52 }
 0x29b   :  { %v192_v54 = vadd.s32 %v191_v45, %v189_v50  ;;  %393 = vmatprep.mubr.msk.f32.mxu1 %vm150_vm1, %v370_v53  ;;  %v305_v58 = vmax.f32 %v303_v51, 0.0 }
 0x29c   :  { %v302_v56 = vpop.xlane.xlu1 %301 }
 0x29d   :  { %v290_v57 = vrot.slane %v192_v54, %v289_v49  ;;  %vm194_vm9 = vcmp.eq.s32.totalorder %v158_v14, %v192_v54  ;;  %v304_v59 = vsub.f32 %v302_v56, %v156_v18  ;;  %v312_v63 = vrot.slane %v305_v58, %v284_v46 }
 0x29e   :  { %v371_v60 = vsel %vm194_vm9, 1.0, %v516_v52 }
 0x29f   :  { %v306_v61 = vmax.f32 %v304_v59, 0.0  ;;  %394 = vmatmul.mubr.msk.f32.vlgmr.msra.gmra.mxu1 %vm150_vm1, %v371_v60  ;;  %v292_v62 = vsel %vm291_vm7, %v290_v57, %v285_v55 }
 0x2a0   :  { %294 = vst.msk [vmem:[#allocation8] sm:$0x1] %vm293_vm8, %v292_v62 }
 0x2a1   :  { %v316_v0 = vrot.slane %v306_v61, %v289_v49 }
 0x2a3   :  { %v317_v1 = vsel %vm291_vm7, %v316_v0, %v312_v63 }
 0x2a4   :  { %319 = vst.msk [vmem:[#allocation10] sm:$0x1] %vm293_vm8, %v317_v1 }
 0x2a5   :  { %455 = shalt.err (!%p452_p0)
}
 0x2a6   :  { %341 = dma.vmem_to_hbm [thread:$0]  %s339_s30, 16, %s597_s4, [#allocation9]  }
 0x2a7   :  { %s518_s10 = smov [#allocation10]  }
 0x2a8   :  { %s348_s11 = sshll.u32 %s518_s10, 4  ;;  %s349_s11 = int_to_ptr.vmem [resolvable:$true] %s348_s11 }
 0x2a9   :  { %s464_s12 = scalar_lea.vmem %s349_s11, 16  ;;  %s468_s13 = scalar_lea.vmem %s349_s11, 32 }
 0x2aa   :  { %p465_p1 = scmp.ne.s32.totalorder %s349_s11, %s464_s12  ;;  %p469_p2 = scmp.lt.s32.totalorder %s349_s11, %s349_s11 }
 0x2ab   :  { %p470_p3 = scmp.lt.s32.totalorder %s468_s13, %s464_s12 }
 0x2ad   :  { %p471_p4 = por %p470_p3, %p469_p2 }
 0x2af   :  { %p472_p5 = pnand %p471_p4, %p465_p1 }
 0x2b1   :  { %475 = shalt.err (!%p472_p5)
}
 0x2b2   :  { %351 = dma.vmem_to_hbm [thread:$0]  %s349_s11, 16, %s598_s5, [#allocation9]  }
 0x2b3   :  { %s519_s16 = smov [#allocation7]  }
 0x2b4   :  { %s325_s17 = sshll.u32 %s519_s16, 4  ;;  %s326_s17 = int_to_ptr.vmem [resolvable:$true] %s325_s17 }
 0x2b5   :  { %s484_s4 = scalar_lea.vmem %s326_s17, 256  ;;  %p489_p7 = scmp.lt.s32.totalorder %s326_s17, %s326_s17 }
 0x2b6   :  { %p485_p6 = scmp.ne.s32.totalorder %s326_s17, %s484_s4  ;;  %p490_p8 = scmp.lt.s32.totalorder %s484_s4, %s484_s4 }
 0x2b8   :  { %p491_p9 = por %p490_p8, %p489_p7 }
 0x2ba   :  { %p492_p10 = pnand %p491_p9, %p485_p6 }
 0x35f   :  { %v395_v2 = vpop.f32.mrf.mxu1 }
 0x360   :  { %281 = vst.msk [vmem:[#allocation7 + $0x8] sm:$0xff] %vm51_vm0, %v395_v2 }
 0x361   :  { %v271_v3 = vpop.f32.mrf.mxu1 }
 0x362   :  { %280 = vst.msk [vmem:[#allocation7] sm:$0xff] %vm51_vm0, %v271_v3 }
 0x363   :  { %495 = shalt.err (!%p492_p10)
}
 0x364   :  { %331 = dma.vmem_to_hbm [thread:$0]  %s326_s17, 256, %s596_s3, [#allocation4], %s513_s21, %s513_s21, %s514_s22  }
 0x365   :  { %508 = dma.done.wait [#allocation4], 256  }
 0x366   :  { %509 = vsyncadd [#allocation4], 4294967040 }
 0x367   :  { %510 = dma.done.wait [#allocation9], 32  }
 0x368   :  { %511 = vsyncadd [#allocation9], 4294967264 }
 0x369   :  { %361 = vsyncpa [#allocation3], 1 }
 0x36a   :  { %362 = vsyncpa [#allocation6], 1 }
 0x36b   :  { %363 = vsyncpa [#allocation4], 1 }
 0x36c   :  { %364 = vsyncpa [#allocation9], 1 }

</bundles_post_ra>
